<compile_context>
chip_gen: v6e
topology: v6e:2x2x1
jax: 0.10.0
libtpu: 0.0.40
codegen_flags: <defaults>
</compile_context>

<pallas_src>
import math
from functools import partial

import jax
import jax.numpy as jnp
from jax.experimental import pallas as pl
from jax.experimental.pallas import tpu as pltpu


def _round_up(x, m):
    return ((x + m - 1) // m) * m


def _vmem_capacity_bytes():
    try:
        return int(pltpu.get_tpu_info().vmem_capacity_bytes)
    except Exception:
        return 128 * 1024 * 1024  # v5e/v6e default; v7x has 64 MiB per TC


_VMEM_BYTES = _vmem_capacity_bytes()


def _choose_tm(M):
    """Row-tile size.

    * tiny M: a single full-dim block (always layout-legal; nothing to pipeline)
    * otherwise aim for >= 8 grid steps (>= 4 pipelined steps per v7x core),
      rows a multiple of 128 (MXU-friendly, bf16 sublane packed), capped at
      512 on 64 MiB-VMEM chips and 1024 on 128 MiB chips.
    """
    if M <= 256:
        return M
    cap = 1024 if _VMEM_BYTES >= 96 * 1024 * 1024 else 512
    tm = min(cap, _round_up(pl.cdiv(M, 8), 128))
    return min(tm, M)


def _vmem_plan(M, Kp, Dp, in_bytes, out_bytes):
    """Pick tm and an explicit VMEM limit for the pipeline buffers."""
    cap = (_VMEM_BYTES // 4) * 3  # leave 25% headroom

    def need(t):
        return (3 * t * Kp * in_bytes        # patches tile (Buffered(3))
                + 2 * t * Dp * out_bytes     # output tile (double-buffered)
                + 2 * Kp * Dp * in_bytes     # resident weight (constant index)
                + 2 * 8 * Dp * 4             # packed bias/gamma/beta (f32)
                + (2 << 20))                 # Mosaic internal scratch slack

    tm = _choose_tm(M)
    while tm > 128 and need(tm) > cap:
        tm = max(128, tm // 2)
    return tm, int(min(max(need(tm), 16 << 20), cap))


def _make_kernel(d_real, d_pad):
    """y = x @ W + b (MXU, f32 accumulate), then LayerNorm over d_real lanes."""
    need_mask = d_pad != d_real
    inv_d = 1.0 / float(d_real)

    def kernel(x_ref, w_ref, p_ref, o_ref):
        # Native (bf16) tiles straight into the MXU; f32 accumulation.
        y = jnp.dot(x_ref[...], w_ref[...], preferred_element_type=jnp.float32)

        bias = p_ref[0:1, :].astype(jnp.float32)
        gamma = p_ref[1:2, :].astype(jnp.float32)
        beta = p_ref[2:3, :].astype(jnp.float32)
        y = y + bias

        if need_mask:
            # embed_dim padded to a lane multiple; gamma/beta are zero-padded
            # in prepare_patch_embed_params (load-bearing invariant).
            lane = jax.lax.broadcasted_iota(jnp.int32, y.shape, dimension=1)
            y = jnp.where(lane < d_real, y, 0.0)

        # Single-pass LN stats: the two reductions issue back-to-back on the
        # XLU.  f32 throughout; clamp guards mild cancellation.
        s1 = jnp.sum(y, axis=-1, keepdims=True)
        s2 = jnp.sum(y * y, axis=-1, keepdims=True)
        mean = s1 * inv_d
        var = jnp.maximum(s2 * inv_d - mean * mean, 0.0)
        y_hat = (y - mean) * jax.lax.rsqrt(var + 1e-5)  # eps matches torch LN
        o_ref[...] = (y_hat * gamma + beta).astype(o_ref.dtype)

    return kernel


def prepare_patch_embed_params(conv_w, conv_b, ln_gamma, ln_beta,
                               compute_dtype=jnp.bfloat16):
    """One-time param prep (out of the per-call path).

    Conv2d weight -> (Kp, Dp) matmul layout, cast to the MXU compute dtype
    (bf16 by default); K padded to a lane multiple; embed dim padded only if
    D > 128 and not a multiple of 128.  Bias / gamma / beta packed into one
    sublane-aligned (8, Dp) f32 block (rows 0..2; padding is zero, which the
    masked-LN path relies on).
    """
    D, C, ph, pw = conv_w.shape
    K = C * ph * pw
    Kp = K if K % 128 == 0 else _round_up(K, 128)
    Dp = D if (D <= 128 or D % 128 == 0) else _round_up(D, 128)

    w = conv_w.reshape(D, K).T.astype(jnp.float32)  # (K, D), matches patch order
    if Kp != K or Dp != D:
        w = jnp.pad(w, ((0, Kp - K), (0, Dp - D)))
    w = w.astype(compute_dtype)

    pack = jnp.zeros((8, Dp), jnp.float32)
    pack = pack.at[0, :D].set(conv_b.astype(jnp.float32))
    pack = pack.at[1, :D].set(ln_gamma.astype(jnp.float32))
    pack = pack.at[2, :D].set(ln_beta.astype(jnp.float32))
    return w, pack


@partial(jax.jit, static_argnames=("patch_size", "embed_dim"))
def _patch_embed_jit(x_nchw, w, pack, *, patch_size, embed_dim):
    B, C, H, W = x_nchw.shape
    p = patch_size
    assert H % p == 0 and W % p == 0
    Hp, Wp = H // p, W // p
    N = Hp * Wp
    M = B * N
    Kp, Dp = w.shape
    K = C * p * p
    D = embed_dim

    compute_dtype = w.dtype
    out_dtype = x_nchw.dtype
    in_bytes = jnp.dtype(compute_dtype).itemsize
    out_bytes = jnp.dtype(out_dtype).itemsize

    # Patchify glue (pure layout), in the compute dtype so the stream is
    # half-width; per-patch flatten order (C, ph, pw) matches Conv2d weights.
    # allow_input_fusion below lets XLA fold this chain into the Pallas DMA.
    patches = x_nchw.astype(compute_dtype).reshape(B, C, Hp, p, Wp, p)
    patches = patches.transpose(0, 2, 4, 1, 3, 5).reshape(M, K)
    if Kp != K:
        # Lane-dense K.  If profiling shows this pad defeating input fusion,
        # it can be dropped together with the weight K-pad (full-dim blocks
        # stay legal either way).
        patches = jnp.pad(patches, ((0, 0), (0, Kp - K)))

    tm, vmem_limit = _vmem_plan(M, Kp, Dp, in_bytes, out_bytes)
    n_steps = pl.cdiv(M, tm)  # no M padding: Pallas clips the partial block

    if n_steps >= 3:
        patches_spec = pl.BlockSpec((tm, Kp), lambda i: (i, 0),
                                    pipeline_mode=pl.Buffered(3))
    else:
        patches_spec = pl.BlockSpec((tm, Kp), lambda i: (i, 0))

    cost = pl.CostEstimate(
        flops=2 * M * Kp * Dp,
        transcendentals=M,  # one rsqrt per row
        bytes_accessed=(M * Kp * in_bytes + Kp * Dp * in_bytes
                        + 8 * Dp * 4 + M * Dp * out_bytes),
    )

    out = pl.pallas_call(
        _make_kernel(D, Dp),
        out_shape=jax.ShapeDtypeStruct((M, Dp), out_dtype),
        grid_spec=pltpu.PrefetchScalarGridSpec(
            num_scalar_prefetch=0,
            grid=(n_steps,),
            in_specs=[
                patches_spec,                               # patch tiles
                pl.BlockSpec((Kp, Dp), lambda i: (0, 0)),   # resident weight
                pl.BlockSpec((8, Dp), lambda i: (0, 0)),    # bias/gamma/beta
            ],
            out_specs=pl.BlockSpec((tm, Dp), lambda i: (i, 0)),
        ),
        compiler_params=pltpu.CompilerParams(
            dimension_semantics=("parallel",),
            vmem_limit_bytes=vmem_limit,
            allow_input_fusion=[True, False, False],
        ),
        cost_estimate=cost,
    )(patches, w, pack)

    if Dp != D:
        out = out[:, :D]
    return out.reshape(B, N, D)


def patch_embed(x_nchw, params, *, patch_size, embed_dim):
    """params = prepare_patch_embed_params(...).  Returns (x, Hp, Wp) like torch."""
    w, pack = params
    Hp = x_nchw.shape[2] // patch_size
    Wp = x_nchw.shape[3] // patch_size
    out = _patch_embed_jit(x_nchw, w, pack,
                           patch_size=patch_size, embed_dim=embed_dim)
    return out, Hp, Wp


def patch_embed_ref(x_nchw, conv_w, conv_b, ln_gamma, ln_beta, patch_size):
    """Pure-JAX reference matching the PyTorch forward."""
    p = patch_size
    y = jax.lax.conv_general_dilated(
        x_nchw.astype(jnp.float32), conv_w.astype(jnp.float32),
        window_strides=(p, p), padding="VALID",
        dimension_numbers=("NCHW", "OIHW", "NCHW"))
    y = y + conv_b.reshape(1, -1, 1, 1)
    B_, D, Hp, Wp = y.shape
    y = y.reshape(B_, D, Hp * Wp).transpose(0, 2, 1)  # (B, N, D)
    mean = jnp.mean(y, axis=-1, keepdims=True)
    var = jnp.mean((y - mean) ** 2, axis=-1, keepdims=True)
    y = (y - mean) / jnp.sqrt(var + 1e-5)
    y = y * ln_gamma + ln_beta
    return y, Hp, Wp


if __name__ == "__main__":
    # Small shapes consistent with the module: img_size=16, patch_size=4,
    # in_chans=4, embed_dim=32, batch=2  ->  num_patches = 16.
    B, C, H, W = 2, 4, 16, 16
    p = 4
    D = 32

    key = jax.random.PRNGKey(0)
    k_x, k_w, k_b, k_g, k_beta = jax.random.split(key, 5)
    x = jax.random.normal(k_x, (B, C, H, W), dtype=jnp.float32)
    conv_w = 0.1 * jax.random.normal(k_w, (D, C, p, p), dtype=jnp.float32)
    conv_b = 0.1 * jax.random.normal(k_b, (D,), dtype=jnp.float32)
    ln_gamma = 1.0 + 0.05 * jax.random.normal(k_g, (D,), dtype=jnp.float32)
    ln_beta = 0.05 * jax.random.normal(k_beta, (D,), dtype=jnp.float32)

    params = prepare_patch_embed_params(conv_w, conv_b, ln_gamma, ln_beta)
    out, Hp, Wp = patch_embed(x, params, patch_size=p, embed_dim=D)
    out = jax.block_until_ready(out)

    # Tight check against a reference with the same bf16 rounding of the MXU
    # operands (f32 accumulation and f32 LN in both).
    x_q = x.astype(jnp.bfloat16).astype(jnp.float32)
    w_q = conv_w.astype(jnp.bfloat16).astype(jnp.float32)
    ref_q, Hp_r, Wp_r = patch_embed_ref(x_q, w_q, conv_b, ln_gamma, ln_beta, p)
    # Loose sanity check against the pure-f32 module semantics.
    ref_f32, _, _ = patch_embed_ref(x, conv_w, conv_b, ln_gamma, ln_beta, p)

    assert out.shape == (B, Hp * Wp, D)
    assert (Hp, Wp) == (Hp_r, Wp_r) == (H // p, W // p)
    assert jnp.allclose(out, ref_q, atol=2e-3, rtol=2e-3), \
        float(jnp.max(jnp.abs(out - ref_q)))
    assert jnp.allclose(out, ref_f32, atol=1e-1), \
        float(jnp.max(jnp.abs(out - ref_f32)))

    print("KERNEL_OK")
</pallas_src>

<mosaic_0001>
module attributes {stable_mosaic.version = 11 : i64} {
  func.func @kernel(%arg0: i32, %arg1: memref<32x128xbf16, #tpu.memory_space<vmem>>, %arg2: memref<128x32xbf16, #tpu.memory_space<vmem>>, %arg3: memref<8x32xf32, #tpu.memory_space<vmem>>, %arg4: memref<32x32xf32, #tpu.memory_space<vmem>>) attributes {dimension_semantics = [#tpu.dimension_semantics<parallel>], iteration_bounds = array<i64: 1>, scalar_prefetch = 0 : i64, scratch_operands = 0 : i64, tpu.core_type = #tpu.core_type<tc>, window_params = [{transform_indices = @transform_0, window_bounds = array<i64: 32, 128>}, {pipeline_mode = #tpu.pipeline_mode<synchronous>, transform_indices = @transform_1, window_bounds = array<i64: 128, 32>}, {pipeline_mode = #tpu.pipeline_mode<synchronous>, transform_indices = @transform_2, window_bounds = array<i64: 8, 32>}, {transform_indices = @transform_3, window_bounds = array<i64: 32, 32>}]} {
    %c0 = arith.constant 0 : index
    %c0_0 = arith.constant 0 : index
    %0 = vector.load %arg1[%c0, %c0_0] : memref<32x128xbf16, #tpu.memory_space<vmem>>, vector<32x128xbf16>
    %c0_1 = arith.constant 0 : index
    %c0_2 = arith.constant 0 : index
    %1 = vector.load %arg2[%c0_1, %c0_2] : memref<128x32xbf16, #tpu.memory_space<vmem>>, vector<128x32xbf16>
    %cst = arith.constant dense<0.000000e+00> : vector<32x32xf32>
    %2 = tpu.matmul %0, %1, %cst {dimension_numbers = #tpu.dot_dimension_numbers<[1], [0], [0], [1], [0, 0, 1, 1], [], []>} : vector<32x128xbf16>, vector<128x32xbf16>, vector<32x32xf32> -> vector<32x32xf32>
    %c0_3 = arith.constant 0 : index
    %c0_4 = arith.constant 0 : index
    %3 = vector.load %arg3[%c0_3, %c0_4] : memref<8x32xf32, #tpu.memory_space<vmem>>, vector<1x32xf32>
    %c1 = arith.constant 1 : index
    %c0_5 = arith.constant 0 : index
    %4 = vector.load %arg3[%c1, %c0_5] : memref<8x32xf32, #tpu.memory_space<vmem>>, vector<1x32xf32>
    %c2 = arith.constant 2 : index
    %c0_6 = arith.constant 0 : index
    %5 = vector.load %arg3[%c2, %c0_6] : memref<8x32xf32, #tpu.memory_space<vmem>>, vector<1x32xf32>
    %6 = vector.broadcast %3 : vector<1x32xf32> to vector<32x32xf32>
    %7 = arith.addf %2, %6 : vector<32x32xf32>
    %cst_7 = arith.constant dense<0.000000e+00> : vector<32xf32>
    %8 = vector.multi_reduction <add>, %7, %cst_7 [1] : vector<32x32xf32> to vector<32xf32>
    %9 = vector.shape_cast %8 : vector<32xf32> to vector<32x1xf32>
    %10 = arith.mulf %7, %7 : vector<32x32xf32>
    %cst_8 = arith.constant dense<0.000000e+00> : vector<32xf32>
    %11 = vector.multi_reduction <add>, %10, %cst_8 [1] : vector<32x32xf32> to vector<32xf32>
    %12 = vector.shape_cast %11 : vector<32xf32> to vector<32x1xf32>
    %cst_9 = arith.constant 3.125000e-02 : f32
    %13 = vector.broadcast %cst_9 : f32 to vector<32x1xf32>
    %14 = arith.mulf %9, %13 : vector<32x1xf32>
    %cst_10 = arith.constant 3.125000e-02 : f32
    %15 = vector.broadcast %cst_10 : f32 to vector<32x1xf32>
    %16 = arith.mulf %12, %15 : vector<32x1xf32>
    %17 = arith.mulf %14, %14 : vector<32x1xf32>
    %18 = arith.subf %16, %17 : vector<32x1xf32>
    %cst_11 = arith.constant 0.000000e+00 : f32
    %19 = vector.broadcast %cst_11 : f32 to vector<32x1xf32>
    %20 = arith.maximumf %18, %19 : vector<32x1xf32>
    %21 = vector.broadcast %14 : vector<32x1xf32> to vector<32x32xf32>
    %22 = arith.subf %7, %21 : vector<32x32xf32>
    %cst_12 = arith.constant 9.99999974E-6 : f32
    %23 = vector.broadcast %cst_12 : f32 to vector<32x1xf32>
    %24 = arith.addf %20, %23 : vector<32x1xf32>
    %25 = math.rsqrt %24 : vector<32x1xf32>
    %26 = vector.broadcast %25 : vector<32x1xf32> to vector<32x32xf32>
    %27 = arith.mulf %22, %26 : vector<32x32xf32>
    %28 = vector.broadcast %4 : vector<1x32xf32> to vector<32x32xf32>
    %29 = arith.mulf %27, %28 : vector<32x32xf32>
    %30 = vector.broadcast %5 : vector<1x32xf32> to vector<32x32xf32>
    %31 = arith.addf %29, %30 : vector<32x32xf32>
    %c0_13 = arith.constant 0 : index
    %c0_14 = arith.constant 0 : index
    %32 = vector.load %arg4[%c0_13, %c0_14] : memref<32x32xf32, #tpu.memory_space<vmem>>, vector<32x32xf32>
    tpu.vector_store %arg4[%c0_13, %c0_14], %31 {strides = array<i32>} : memref<32x32xf32, #tpu.memory_space<vmem>>, vector<32x32xf32>,
    return
  }
  func.func @transform_0(%arg0: i32) -> (i32, i32) {
    %c0_i32 = arith.constant 0 : i32
    %c0_i32_0 = arith.constant 0 : i32
    return %arg0, %c0_i32 : i32, i32
  }
  func.func @transform_1(%arg0: i32) -> (i32, i32) {
    %c0_i32 = arith.constant 0 : i32
    %c0_i32_0 = arith.constant 0 : i32
    %c0_i32_1 = arith.constant 0 : i32
    return %c0_i32, %c0_i32_0 : i32, i32
  }
  func.func @transform_2(%arg0: i32) -> (i32, i32) {
    %c0_i32 = arith.constant 0 : i32
    %c0_i32_0 = arith.constant 0 : i32
    %c0_i32_1 = arith.constant 0 : i32
    return %c0_i32, %c0_i32_0 : i32, i32
  }
  func.func @transform_3(%arg0: i32) -> (i32, i32) {
    %c0_i32 = arith.constant 0 : i32
    %c0_i32_0 = arith.constant 0 : i32
    return %arg0, %c0_i32 : i32, i32
  }
}

</mosaic_0001>

<bundles_post_ra>
// kernel: _patch_embed_jit.2
= control target key start
LH: loop header
LB: loop body
LE: loop exit
PB: predicated region body
PF: predicated region fallthrough
CT: control target
= control target key end

     0   :  { %s549_s0 = inlined_call_operand.vmem [shape: bf16[128,32], index: 0, kind: input, shape index: {}]   ;;  %s550_s1 = inlined_call_operand.vmem [shape: f32[8,32], index: 1, kind: input, shape index: {}]   ;;  %s551_s2 = inlined_call_operand.vmem [shape: bf16[32,64], index: 2, kind: input, shape index: {}]   ;;  %s552_s3 = inlined_call_operand.<no memory space> [shape: bf16[], index: 3, kind: input, shape index: {}]   ;;  %s553_s4 = inlined_call_operand.hbm [shape: f32[32,32], index: 4, kind: output, shape index: {}]  }
   0x1   :  { %v9_v0 = vstv %s552_s3 }
   0x2   :  { %v10_v1 = vunpack.i.l.bf16 %v9_v0 }
   0x3   :  { %v399_v2 = vld [vmem:[%s549_s0 + $0x38] sm:$0xff]   ;;  %v33_v3 = vlaneseq  ;;  %v400_v4 = vld [vmem:[%s549_s0 + $0x30] sm:$0xff]   ;;  %v401_v5 = vld [vmem:[%s549_s0 + $0x28] sm:$0xff]  }
   0x4   :  { %375 = vmatprep.subr.bf16.mxu0 %v399_v2  ;;  %v402_v7 = vld [vmem:[%s549_s0 + $0x20] sm:$0xff]   ;;  %v350_v9 = vld [vmem:[%s551_s2 + $0x8] sm:$0xff]  }
   0x5   :  { %376 = vmatpush3.bf16.msra.mxu0 %v399_v2  ;;  %v34_v6 = vand.u32 127, %v33_v3  ;;  %v30_v8 = vld [vmem:[%s551_s2] sm:$0xff]  }
   0x6   :  { %377 = vmatprep.subr.bf16.mxu0 %v400_v4 }
   0x7   :  { %vm36_vm0 = vcmp.lt.s32.totalorder %v34_v6, 64 }
   0x9   :  { %378 = vmatpush3.bf16.msra.mxu0 %v400_v4 }
   0xa   :  { %379 = vmatprep.subr.bf16.mxu0 %v401_v5 }
   0xb   :  { %14 = vsyncpa [#allocation8], 0  ;;  %v31_v10 = vunpack.c.l.bf16 %v30_v8  ;;  %v53_v11 = vunpack.c.h.bf16 %v30_v8  ;;  %v76_v12 = vunpack.c.l.bf16 %v350_v9  ;;  %v99_v13 = vunpack.c.h.bf16 %v350_v9  ;;  %v403_v18 = vld [vmem:[%s549_s0 + $0x18] sm:$0xff]   ;;  %v404_v24 = vld [vmem:[%s549_s0 + $0x10] sm:$0xff]   ;;  %s440_s14 = smov [#allocation7]  }
   0xc   :  { %v439_v19 = vmov 0.0   ;;  %v405_v25 = vld [vmem:[%s549_s0 + $0x8] sm:$0xff]   ;;  %v406_v27 = vld [vmem:[%s549_s0] sm:$0xff]   ;;  %vm248_vm1 = vcmask 261120  }
   0xd   :  { %380 = vmatpush3.bf16.msra.mxu0 %v401_v5  ;;  %v37_v14 = vsel %vm36_vm0, %v31_v10, %v10_v1  ;;  %v59_v15 = vsel %vm36_vm0, %v53_v11, %v10_v1  ;;  %v82_v16 = vsel %vm36_vm0, %v76_v12, %v10_v1  ;;  %v105_v17 = vsel %vm36_vm0, %v99_v13, %v10_v1  ;;  %v352_v29 = vld [vmem:[%s550_s1] ss:$0 sm:$0xff] }
   0xe   :  { %381 = vmatprep.subr.bf16.mxu0 %v402_v7  ;;  %v38_v20 = vpack.c.bf16 %v439_v19, %v37_v14  ;;  %v61_v21 = vpack.c.bf16 %v439_v19, %v59_v15  ;;  %v84_v22 = vpack.c.bf16 %v439_v19, %v82_v16  ;;  %v107_v23 = vpack.c.bf16 %v439_v19, %v105_v17 }
  0x10   :  { %41 = vst [vmem:[#allocation9] sm:$0xf] %v38_v20  ;;  %64 = vst [vmem:[#allocation9 + $0x4] sm:$0xf] %v61_v21  ;;  %v363_v20 = vld [vmem:[%s550_s1 + $0x1] ss:$0 sm:$0xff] }
  0x11   :  { %87 = vst [vmem:[#allocation9 + $0x8] sm:$0xf] %v84_v22  ;;  %110 = vst [vmem:[#allocation9 + $0xc] sm:$0xf] %v107_v23  ;;  %382 = vmatpush3.bf16.msra.mxu0 %v402_v7  ;;  %v364_v22 = vld [vmem:[%s550_s1 + $0x2] ss:$0 sm:$0xff] }
  0x12   :  { %383 = vmatprep.subr.bf16.mxu0 %v403_v18  ;;  %s338_s1 = sshll.u32 %s440_s14, 4  ;;  %s339_s1 = int_to_ptr.vmem [resolvable:$true] %s338_s1 }
  0x13   :  { %s417_s15 = scalar_lea.vmem %s339_s1, 512  ;;  %p422_p1 = scmp.lt.s32.totalorder %s339_s1, %s339_s1 }
  0x14   :  { %p418_p0 = scmp.ne.s32.totalorder %s339_s1, %s417_s15  ;;  %p423_p2 = scmp.lt.s32.totalorder %s417_s15, %s417_s15 }
  0x15   :  { %384 = vmatpush3.bf16.msra.mxu0 %v403_v18 }
  0x16   :  { %385 = vmatprep.subr.bf16.mxu0 %v404_v24  ;;  %p424_p3 = por %p423_p2, %p422_p1 }
  0x17   :  { %v407_v26 = vld [vmem:[#allocation9] sm:$0xff]  }
  0x18   :  { %391 = vmatprep.mubr.bf16.mxu0 %v407_v26  ;;  %v408_v28 = vld [vmem:[#allocation9 + $0x8] sm:$0xff]   ;;  %p425_p4 = pnand %p424_p3, %p418_p0 }
  0x19   :  { %386 = vmatpush3.bf16.msra.mxu0 %v404_v24 }
  0x1a   :  { %387 = vmatprep.subr.bf16.mxu0 %v405_v25 }
  0x1d   :  { %388 = vmatpush3.bf16.msra.mxu0 %v405_v25 }
  0x1e   :  { %389 = vmatprep.subr.bf16.mxu0 %v406_v27 }
  0x21   :  { %390 = vmatpush3.bf16.msra.mxu0 %v406_v27 }
  0x24   :  { %392 = vmatmul.mubr.bf16.vlgmr.msra.gmra.mxu0 %v408_v28 }
  0xe4   :  { %v393_v30 = vpop.f32.mrf.mxu0 }
  0xe5   :  { %v504_v31 = vadd.f32 %v393_v30, %v352_v29 }
  0xe6   :  { %v233_v32 = vpop.f32.mrf.mxu0 }
  0xe7   :  { %v506_v33 = vadd.f32 %v352_v29, %v233_v32  ;;  %v255_v34 = vsel %vm248_vm1, %v504_v31, 0.0  ;;  %v263_v47 = vmul.f32 %v504_v31, %v504_v31 }
  0xe8   :  { %256 = vadd.xlane.f32.xlu1 %v255_v34  ;;  %v394_v35 = vpop.f32.mrf.mxu0 }
  0xe9   :  { %v510_v36 = vadd.f32 %v394_v35, %v352_v29  ;;  %v249_v37 = vsel %vm248_vm1, %v506_v33, 0.0  ;;  %v261_v38 = vmul.f32 %v506_v33, %v506_v33  ;;  %v271_v49 = vsel %vm248_vm1, %v263_v47, 0.0 }
  0xea   :  { %v236_v39 = vpop.f32.mrf.mxu0  ;;  %250 = vadd.xlane.f32.xlu0 %v249_v37 }
  0xeb   :  { %v516_v40 = vadd.f32 %v352_v29, %v236_v39  ;;  %v258_v41 = vsel %vm248_vm1, %v510_v36, 0.0  ;;  %v265_v42 = vsel %vm248_vm1, %v261_v38, 0.0  ;;  %v264_v45 = vmul.f32 %v510_v36, %v510_v36 }
  0xec   :  { %259 = vadd.xlane.f32.xlu1 %v258_v41 }
  0xed   :  { %v262_v43 = vmul.f32 %v516_v40, %v516_v40  ;;  %v252_v46 = vsel %vm248_vm1, %v516_v40, 0.0  ;;  %v274_v48 = vsel %vm248_vm1, %v264_v45, 0.0 }
  0xee   :  { %266 = vadd.xlane.f32.xlu0 %v265_v42 }
  0xef   :  { %v268_v44 = vsel %vm248_vm1, %v262_v43, 0.0 }
  0xf0   :  { %269 = vadd.xlane.f32.xlu1 %v268_v44 }
  0xf2   :  { %253 = vadd.xlane.f32.xlu0 %v252_v46 }
  0xf4   :  { %275 = vadd.xlane.f32.xlu1 %v274_v48 }
  0xf6   :  { %272 = vadd.xlane.f32.xlu0 %v271_v49 }
 0x171   :  { %v257_v50 = vpop.xlane.xlu1 %256 }
 0x172   :  { %v279_v60 = vmul.f32 0.03125, %v257_v50 }
 0x173   :  { %v251_v51 = vpop.xlane.xlu0 %250 }
 0x174   :  { %v277_v52 = vmul.f32 0.03125, %v251_v51  ;;  %v287_v6 = vmul.f32 %v279_v60, %v279_v60  ;;  %v299_v29 = vsub.f32 %v504_v31, %v279_v60 }
 0x175   :  { %v260_v53 = vpop.xlane.xlu1 %259 }
 0x176   :  { %v285_v55 = vmul.f32 %v277_v52, %v277_v52  ;;  %v280_v57 = vmul.f32 0.03125, %v260_v53  ;;  %v297_v18 = vsub.f32 %v506_v33, %v277_v52 }
 0x177   :  { %v267_v54 = vpop.xlane.xlu0 %266 }
 0x178   :  { %v281_v56 = vmul.f32 0.03125, %v267_v54  ;;  %v288_v0 = vmul.f32 %v280_v57, %v280_v57  ;;  %v300_v27 = vsub.f32 %v510_v36, %v280_v57 }
 0x179   :  { %v270_v58 = vpop.xlane.xlu1 %269 }
 0x17a   :  { %v289_v59 = vsub.f32 %v281_v56, %v285_v55  ;;  %v282_v3 = vmul.f32 0.03125, %v270_v58 }
 0x17b   :  { %v254_v61 = vpop.xlane.xlu0 %253 }
 0x17c   :  { %v293_v62 = vmax.f32 %v289_v59, 0.0  ;;  %v278_v63 = vmul.f32 0.03125, %v254_v61 }
 0x17d   :  { %v276_v1 = vpop.xlane.xlu1 %275 }
 0x17e   :  { %v301_v2 = vadd.f32 1e-05, %v293_v62  ;;  %v286_v4 = vmul.f32 %v278_v63, %v278_v63  ;;  %v284_v5 = vmul.f32 0.03125, %v276_v1  ;;  %v298_v25 = vsub.f32 %v516_v40, %v278_v63 }
 0x17f   :  { %v273_v7 = vpop.xlane.xlu0 %272 }
 0x180   :  { %409 = vrsqrt.f32 %v301_v2  ;;  %v290_v8 = vsub.f32 %v282_v3, %v286_v4  ;;  %v292_v9 = vsub.f32 %v284_v5, %v288_v0  ;;  %v283_v10 = vmul.f32 0.03125, %v273_v7 }
 0x182   :  { %v294_v11 = vmax.f32 %v290_v8, 0.0  ;;  %v296_v12 = vmax.f32 %v292_v9, 0.0  ;;  %v291_v13 = vsub.f32 %v283_v10, %v287_v6 }
 0x184   :  { %v302_v14 = vadd.f32 1e-05, %v294_v11  ;;  %v304_v15 = vadd.f32 1e-05, %v296_v12  ;;  %v295_v16 = vmax.f32 %v291_v13, 0.0 }
 0x186   :  { %411 = vrsqrt.f32 %v302_v14  ;;  %v303_v17 = vadd.f32 1e-05, %v295_v16 }
 0x187   :  { %413 = vrsqrt.f32 %v304_v15 }
 0x188   :  { %415 = vrsqrt.f32 %v303_v17 }
 0x18d   :  { %v410_v19 = vpop.eup %409 }
 0x18e   :  { %v309_v21 = vmul.f32 %v410_v19, %v297_v18 }
 0x190   :  { %v317_v23 = vmul.f32 %v363_v20, %v309_v21 }
 0x192   :  { %v325_v24 = vadd.f32 %v364_v22, %v317_v23 }
 0x193   :  { %v412_v26 = vpop.eup %411 }
 0x194   :  { %v414_v28 = vpop.eup %413  ;;  %v310_v30 = vmul.f32 %v412_v26, %v298_v25  ;;  %329 = vst.msk [vmem:[#allocation7] sm:$0xff] %vm248_vm1, %v325_v24 }
 0x195   :  { %v416_v32 = vpop.eup %415  ;;  %v312_v33 = vmul.f32 %v414_v28, %v300_v27 }
 0x196   :  { %v318_v34 = vmul.f32 %v363_v20, %v310_v30  ;;  %v311_v35 = vmul.f32 %v416_v32, %v299_v29 }
 0x197   :  { %v320_v37 = vmul.f32 %v363_v20, %v312_v33 }
 0x198   :  { %v326_v38 = vadd.f32 %v364_v22, %v318_v34  ;;  %v319_v39 = vmul.f32 %v363_v20, %v311_v35 }
 0x199   :  { %v328_v41 = vadd.f32 %v364_v22, %v320_v37 }
 0x19a   :  { %330 = vst.msk [vmem:[#allocation7 + $0x8] sm:$0xff] %vm248_vm1, %v326_v38  ;;  %v327_v40 = vadd.f32 %v364_v22, %v319_v39 }
 0x19b   :  { %332 = vst.msk [vmem:[#allocation7 + $0x18] sm:$0xff] %vm248_vm1, %v328_v41 }
 0x19c   :  { %331 = vst.msk [vmem:[#allocation7 + $0x10] sm:$0xff] %vm248_vm1, %v327_v40 }
 0x19d   :  { %428 = shalt.err (!%p425_p4)
}
 0x19e   :  { %s441_s16 = smov 128   ;;  %s442_s17 = smov 8  }
 0x19f   :  { %344 = dma.vmem_to_hbm [thread:$0]  %s339_s1, 512, %s553_s4, [#allocation8], %s441_s16, %s441_s16, %s442_s17  }
 0x1a0   :  { %437 = dma.done.wait [#allocation8], 512  }
 0x1a1   :  { %438 = vsyncadd [#allocation8], 4294966784 }
 0x1a2   :  { %348 = vsyncpa [#allocation8], 1 }

</bundles_post_ra>
